<compile_context>
chip_gen: v5e
topology: v5e:2x2
jax: 0.10.0
libtpu: 0.0.40
codegen_flags: <defaults>
</compile_context>

<pallas_src>
import math
import jax
import jax.numpy as jnp
from jax import lax
from jax.experimental import pallas as pl
from jax.experimental.pallas import tpu as pltpu

# ---- model config (small, consistent with the module) ----
B = 2            # batch
T = 8            # trg_len
S = 8            # src_len (encoder sequence length)
E = 32           # emb_dim
H = 32           # hid_dim
V = 128          # output_dim (vocab)
K = 3            # kernel_size
L = 2            # n_layers
MAX_LEN = 100
PAD_IDX = 1
SCALE = math.sqrt(0.5)
BT = B * T


def decoder_kernel(embedded_ref, enc_c_ref, enc_cb_ref,
                   emb2hid_w_ref, emb2hid_b_ref,
                   wa_ref, wb_ref, ba_ref, bb_ref,
                   a_h2e_w_ref, a_h2e_b_ref,
                   a_e2h_w_ref, a_e2h_b_ref,
                   w_out_ref, b_out_ref,
                   out_ref, attn_ref):
    f32 = jnp.float32
    bf16 = jnp.bfloat16
    scale = f32(SCALE)

    emb = embedded_ref[...]                                        # (BT, E) f32

    # emb2hid (bf16 MXU operands, f32 accumulate)
    x = jnp.dot(emb.astype(bf16), emb2hid_w_ref[...],
                preferred_element_type=f32) + emb2hid_b_ref[...]   # (BT, H)

    # ---- layer-invariant attention precomputes (hoisted out of the L loop) ----
    a_h2e_w = a_h2e_w_ref[...]                                     # (H, E)
    a_h2e_b = a_h2e_b_ref[...]                                     # (1, E)
    a_e2h_w = a_e2h_w_ref[...]                                     # (E, H)
    a_e2h_b = a_e2h_b_ref[...]                                     # (1, H)

    m_s, base_s, p_enc = [], [], []
    for b in range(B):
        enc_c = enc_c_ref[b]                                       # (S, E)
        enc_cb = enc_cb_ref[b]                                     # (S, E)
        # energy = scale * (conved @ a_h2e_w + a_h2e_b + emb) @ enc_c^T
        #        = conved @ m_s[b] + base_s[b]
        m_b = lax.dot_general(a_h2e_w, enc_c, (((1,), (1,)), ((), ())),
                              preferred_element_type=f32)          # (H, S)
        base_b = lax.dot_general(emb[b * T:(b + 1) * T, :] + a_h2e_b, enc_c,
                                 (((1,), (1,)), ((), ())),
                                 preferred_element_type=f32)       # (T, S)
        m_s.append(m_b * scale)
        base_s.append(base_b * scale)
        # attended = attention @ (enc_cb @ a_e2h_w) + a_e2h_b
        p_enc.append(jnp.dot(enc_cb, a_e2h_w,
                             preferred_element_type=f32))          # (S, H)

    # row position within its own sequence (for causal zero-fill of shifts)
    row_t = lax.broadcasted_iota(jnp.int32, (BT, 1), 0) % T
    zero_pad = jnp.zeros((K - 1, H), f32)

    attn_last = jnp.zeros((BT, S), f32)
    for l in range(L):
        # Causal conv as im2col: lane blocks [tap0 | tap1 | tap2], tap j reads
        # the input shifted down by (K-1-j) rows. The constant pad-value
        # contribution is pre-folded into ba/bb, so shifted-in rows are
        # zero-filled; rows leaking across the batch boundary are masked too.
        padded = jnp.concatenate([zero_pad, x], axis=0)            # (BT+K-1, H)
        parts = []
        for j in range(K):
            off = K - 1 - j
            if off == 0:
                parts.append(x)
            else:
                sh = padded[j:j + BT, :]
                parts.append(jnp.where(row_t < off, 0.0, sh))
        im2col = jnp.concatenate(parts, axis=1).astype(bf16)       # (BT, K*H)

        a_half = jnp.dot(im2col, wa_ref[l],
                         preferred_element_type=f32) + ba_ref[l]   # (BT, H)
        b_half = jnp.dot(im2col, wb_ref[l],
                         preferred_element_type=f32) + bb_ref[l]   # (BT, H)
        conved = a_half * jax.nn.sigmoid(b_half)                   # GLU, (BT, H)

        # ---- attention (per batch element; tiny dots kept in f32) ----
        att_parts, attd_parts = [], []
        for b in range(B):
            c_b = conved[b * T:(b + 1) * T, :]                     # (T, H)
            energy = jnp.dot(c_b, m_s[b],
                             preferred_element_type=f32) + base_s[b]  # (T, S)
            energy = energy - jnp.max(energy, axis=-1, keepdims=True)
            p = jnp.exp(energy)
            att = p * pl.reciprocal(jnp.sum(p, axis=-1, keepdims=True),
                                    approx=True)                   # (T, S)
            attended = jnp.dot(att, p_enc[b],
                               preferred_element_type=f32) + a_e2h_b  # (T, H)
            att_parts.append(att)
            attd_parts.append(attended)
        attn_last = jnp.concatenate(att_parts, axis=0)             # (BT, S)
        attended = jnp.concatenate(attd_parts, axis=0)             # (BT, H)

        conved = (conved + attended) * scale
        x = (conved + x) * scale                                   # residual

    # fused hid2emb + fc_out
    out = jnp.dot(x.astype(bf16), w_out_ref[...],
                  preferred_element_type=f32) + b_out_ref[...]     # (BT, V)

    out_ref[...] = out
    attn_ref[...] = attn_last


def _full_spec(shape):
    nd = len(shape)
    return pl.BlockSpec(shape, lambda i, _nd=nd: (0,) * _nd)


def prepare_inputs(params):
    """Host-side weight preparation (would be cached in a real deployment)."""
    bf16 = jnp.bfloat16
    conv_w = params["conv_w"]                      # (L, K, H, 2H)
    conv_b = params["conv_b"]                      # (L, 1, 2H)

    # im2col conv weights, split into lane-aligned GLU halves.
    w_flat = conv_w.reshape(L, K * H, 2 * H)       # tap j -> row block j
    wa = w_flat[:, :, :H].astype(bf16)             # (L, K*H, H)
    wb = w_flat[:, :, H:].astype(bf16)             # (L, K*H, H)

    # Constant pad contribution (torch.zeros(...).fill_(trg_pad_idx)) folded
    # into a per-output-row bias: only rows t < K-1 read the pad region.
    colsum = conv_w.sum(axis=2)                    # (L, K, 2H)
    pad_rows = []
    for t in range(T):
        if t <= K - 2:
            pad_rows.append(float(PAD_IDX) * colsum[:, :K - 1 - t, :].sum(axis=1))
        else:
            pad_rows.append(jnp.zeros((L, 2 * H), jnp.float32))
    pad_c = jnp.stack(pad_rows, axis=1)            # (L, T, 2H)
    bias_full = jnp.tile(conv_b + pad_c, (1, B, 1))  # (L, B*T, 2H)
    ba = bias_full[:, :, :H]
    bb = bias_full[:, :, H:]

    # hid2emb and fc_out fused (dropout is identity, no nonlinearity between).
    w_out = (params["hid2emb_w"] @ params["fc_w"]).astype(bf16)           # (H, V)
    b_out = params["hid2emb_b"] @ params["fc_w"] + params["fc_b"]         # (1, V)

    return [
        params["emb2hid_w"].astype(bf16), params["emb2hid_b"],
        wa, wb, ba, bb,
        params["a_h2e_w"], params["a_h2e_b"],
        params["a_e2h_w"], params["a_e2h_b"],
        w_out, b_out,
    ]


def decoder_forward(embedded, encoder_conved, encoder_combined, params):
    """embedded: (B,T,E) f32; encoder_*: (B,S,E) f32."""
    weight_args = prepare_inputs(params)
    emb_flat = embedded.reshape(BT, E)

    in_specs = [
        _full_spec((BT, E)),        # embedded (batch folded into rows)
        _full_spec((B, S, E)),      # encoder_conved
        _full_spec((B, S, E)),      # encoder_combined
    ] + [_full_spec(tuple(w.shape)) for w in weight_args]

    out_specs = [
        _full_spec((BT, V)),        # logits (lane-dense, V=128)
        _full_spec((BT, S)),        # attention of last layer
    ]

    out_shape = (
        jax.ShapeDtypeStruct((BT, V), jnp.float32),
        jax.ShapeDtypeStruct((BT, S), jnp.float32),
    )

    f = pl.pallas_call(
        decoder_kernel,
        out_shape=out_shape,
        grid_spec=pltpu.PrefetchScalarGridSpec(
            num_scalar_prefetch=0,
            grid=(1,),               # single invocation: batch folded into rows
            in_specs=in_specs,
            out_specs=out_specs,
        ),
        compiler_params=pltpu.CompilerParams(
            dimension_semantics=("arbitrary",)),
    )
    out_flat, attn_flat = f(emb_flat, encoder_conved, encoder_combined, *weight_args)
    return out_flat.reshape(B, T, V), attn_flat.reshape(B, T, S)


def reference_forward(embedded, encoder_conved, encoder_combined, params):
    """Pure-JAX f32 reference with the original (unfused) math, vmapped over B."""
    scale = jnp.float32(SCALE)

    def one(emb, enc_c, enc_cb):
        x = emb @ params["emb2hid_w"] + params["emb2hid_b"][0]
        pad_rows = jnp.full((K - 1, H), jnp.float32(PAD_IDX))
        attn = jnp.zeros((T, S), jnp.float32)
        for l in range(L):
            padded = jnp.concatenate([pad_rows, x], axis=0)
            conved = jnp.zeros((T, 2 * H), jnp.float32) + params["conv_b"][l]
            for j in range(K):
                conved = conved + padded[j:j + T, :] @ params["conv_w"][l, j]
            conved = conved[:, :H] * jax.nn.sigmoid(conved[:, H:])
            conved_emb = conved @ params["a_h2e_w"] + params["a_h2e_b"][0]
            combined = (conved_emb + emb) * scale
            energy = combined @ enc_c.T
            attn = jax.nn.softmax(energy, axis=-1)
            attended = attn @ enc_cb
            attended = attended @ params["a_e2h_w"] + params["a_e2h_b"][0]
            conved = (conved + attended) * scale
            conved = (conved + x) * scale
            x = conved
        c = x @ params["hid2emb_w"] + params["hid2emb_b"][0]
        out = c @ params["fc_w"] + params["fc_b"][0]
        return out, attn

    return jax.vmap(one)(embedded, encoder_conved, encoder_combined)


def init_params(key):
    ks = jax.random.split(key, 16)

    def lin(k, fan_in, shape):
        return jax.random.normal(k, shape, jnp.float32) / math.sqrt(fan_in)

    params = {
        "tok_emb": lin(ks[0], E, (V, E)),
        "pos_emb": lin(ks[1], E, (MAX_LEN, E)),
        "emb2hid_w": lin(ks[2], E, (E, H)),
        "emb2hid_b": jnp.zeros((1, H), jnp.float32),
        # conv weights prepared per-tap, (L, K, in=H, out=2H)
        "conv_w": lin(ks[3], H * K, (L, K, H, 2 * H)),
        "conv_b": jnp.zeros((L, 1, 2 * H), jnp.float32),
        "a_h2e_w": lin(ks[4], H, (H, E)),
        "a_h2e_b": jnp.zeros((1, E), jnp.float32),
        "a_e2h_w": lin(ks[5], E, (E, H)),
        "a_e2h_b": jnp.zeros((1, H), jnp.float32),
        "hid2emb_w": lin(ks[6], H, (H, E)),
        "hid2emb_b": jnp.zeros((1, E), jnp.float32),
        "fc_w": lin(ks[7], E, (E, V)),
        "fc_b": jnp.zeros((1, V), jnp.float32),
    }
    return params, ks


if __name__ == "__main__":
    key = jax.random.PRNGKey(0)
    params, ks = init_params(key)

    # inputs
    trg = jax.random.randint(ks[8], (B, T), 0, V)                 # (B, T) int32
    encoder_conved = jax.random.normal(ks[9], (B, S, E), jnp.float32)
    encoder_combined = jax.random.normal(ks[10], (B, S, E), jnp.float32)

    # embedding lookups (gather stays in plain JAX glue)
    pos = jnp.broadcast_to(jnp.arange(T)[None, :], (B, T))
    embedded = params["tok_emb"][trg] + params["pos_emb"][pos]    # (B, T, E)
    # TODO(synk): dropout omitted (inference / identity).

    out, attn = decoder_forward(embedded, encoder_conved, encoder_combined, params)
    out = jax.block_until_ready(out)
    attn = jax.block_until_ready(attn)

    ref_out, ref_attn = reference_forward(embedded, encoder_conved,
                                          encoder_combined, params)

    assert out.shape == (B, T, V) and attn.shape == (B, T, S)
    assert bool(jnp.allclose(out, ref_out, rtol=2e-2, atol=2e-2)), "logits mismatch"
    assert bool(jnp.allclose(attn, ref_attn, rtol=2e-2, atol=2e-2)), "attention mismatch"

    print("KERNEL_OK")
</pallas_src>

<mosaic_0001>
module attributes {stable_mosaic.version = 11 : i64} {
  func.func @decoder_kernel(%arg0: i32, %arg1: memref<16x32xf32, #tpu.memory_space<vmem>>, %arg2: memref<2x8x32xf32, #tpu.memory_space<vmem>>, %arg3: memref<2x8x32xf32, #tpu.memory_space<vmem>>, %arg4: memref<32x32xbf16, #tpu.memory_space<vmem>>, %arg5: memref<1x32xf32, #tpu.memory_space<vmem>>, %arg6: memref<2x96x32xbf16, #tpu.memory_space<vmem>>, %arg7: memref<2x96x32xbf16, #tpu.memory_space<vmem>>, %arg8: memref<2x16x32xf32, #tpu.memory_space<vmem>>, %arg9: memref<2x16x32xf32, #tpu.memory_space<vmem>>, %arg10: memref<32x32xf32, #tpu.memory_space<vmem>>, %arg11: memref<1x32xf32, #tpu.memory_space<vmem>>, %arg12: memref<32x32xf32, #tpu.memory_space<vmem>>, %arg13: memref<1x32xf32, #tpu.memory_space<vmem>>, %arg14: memref<32x128xbf16, #tpu.memory_space<vmem>>, %arg15: memref<1x128xf32, #tpu.memory_space<vmem>>, %arg16: memref<16x128xf32, #tpu.memory_space<vmem>>, %arg17: memref<16x8xf32, #tpu.memory_space<vmem>>) attributes {dimension_semantics = [#tpu.dimension_semantics<arbitrary>], iteration_bounds = array<i64: 1>, scalar_prefetch = 0 : i64, scratch_operands = 0 : i64, tpu.core_type = #tpu.core_type<tc>, window_params = [{pipeline_mode = #tpu.pipeline_mode<synchronous>, transform_indices = @transform_0, window_bounds = array<i64: 16, 32>}, {pipeline_mode = #tpu.pipeline_mode<synchronous>, transform_indices = @transform_1, window_bounds = array<i64: 2, 8, 32>}, {pipeline_mode = #tpu.pipeline_mode<synchronous>, transform_indices = @transform_2, window_bounds = array<i64: 2, 8, 32>}, {pipeline_mode = #tpu.pipeline_mode<synchronous>, transform_indices = @transform_3, window_bounds = array<i64: 32, 32>}, {pipeline_mode = #tpu.pipeline_mode<synchronous>, transform_indices = @transform_4, window_bounds = array<i64: 1, 32>}, {pipeline_mode = #tpu.pipeline_mode<synchronous>, transform_indices = @transform_5, window_bounds = array<i64: 2, 96, 32>}, {pipeline_mode = #tpu.pipeline_mode<synchronous>, transform_indices = @transform_6, window_bounds = array<i64: 2, 96, 32>}, {pipeline_mode = #tpu.pipeline_mode<synchronous>, transform_indices = @transform_7, window_bounds = array<i64: 2, 16, 32>}, {pipeline_mode = #tpu.pipeline_mode<synchronous>, transform_indices = @transform_8, window_bounds = array<i64: 2, 16, 32>}, {pipeline_mode = #tpu.pipeline_mode<synchronous>, transform_indices = @transform_9, window_bounds = array<i64: 32, 32>}, {pipeline_mode = #tpu.pipeline_mode<synchronous>, transform_indices = @transform_10, window_bounds = array<i64: 1, 32>}, {pipeline_mode = #tpu.pipeline_mode<synchronous>, transform_indices = @transform_11, window_bounds = array<i64: 32, 32>}, {pipeline_mode = #tpu.pipeline_mode<synchronous>, transform_indices = @transform_12, window_bounds = array<i64: 1, 32>}, {pipeline_mode = #tpu.pipeline_mode<synchronous>, transform_indices = @transform_13, window_bounds = array<i64: 32, 128>}, {pipeline_mode = #tpu.pipeline_mode<synchronous>, transform_indices = @transform_14, window_bounds = array<i64: 1, 128>}, {pipeline_mode = #tpu.pipeline_mode<synchronous>, transform_indices = @transform_15, window_bounds = array<i64: 16, 128>}, {pipeline_mode = #tpu.pipeline_mode<synchronous>, transform_indices = @transform_16, window_bounds = array<i64: 16, 8>}]} {
    %c0 = arith.constant 0 : index
    %c0_0 = arith.constant 0 : index
    %0 = vector.load %arg1[%c0, %c0_0] : memref<16x32xf32, #tpu.memory_space<vmem>>, vector<16x32xf32>
    %1 = arith.truncf %0 : vector<16x32xf32> to vector<16x32xbf16>
    %c0_1 = arith.constant 0 : index
    %c0_2 = arith.constant 0 : index
    %2 = vector.load %arg4[%c0_1, %c0_2] : memref<32x32xbf16, #tpu.memory_space<vmem>>, vector<32x32xbf16>
    %cst = arith.constant dense<0.000000e+00> : vector<16x32xf32>
    %3 = tpu.matmul %1, %2, %cst {dimension_numbers = #tpu.dot_dimension_numbers<[1], [0], [0], [1], [0, 0, 1, 1], [], []>} : vector<16x32xbf16>, vector<32x32xbf16>, vector<16x32xf32> -> vector<16x32xf32>
    %c0_3 = arith.constant 0 : index
    %c0_4 = arith.constant 0 : index
    %4 = vector.load %arg5[%c0_3, %c0_4] : memref<1x32xf32, #tpu.memory_space<vmem>>, vector<1x32xf32>
    %5 = vector.broadcast %4 : vector<1x32xf32> to vector<16x32xf32>
    %6 = arith.addf %3, %5 : vector<16x32xf32>
    %c0_5 = arith.constant 0 : index
    %c0_6 = arith.constant 0 : index
    %7 = vector.load %arg10[%c0_5, %c0_6] : memref<32x32xf32, #tpu.memory_space<vmem>>, vector<32x32xf32>
    %c0_7 = arith.constant 0 : index
    %c0_8 = arith.constant 0 : index
    %8 = vector.load %arg11[%c0_7, %c0_8] : memref<1x32xf32, #tpu.memory_space<vmem>>, vector<1x32xf32>
    %c0_9 = arith.constant 0 : index
    %c0_10 = arith.constant 0 : index
    %9 = vector.load %arg12[%c0_9, %c0_10] : memref<32x32xf32, #tpu.memory_space<vmem>>, vector<32x32xf32>
    %c0_11 = arith.constant 0 : index
    %c0_12 = arith.constant 0 : index
    %10 = vector.load %arg13[%c0_11, %c0_12] : memref<1x32xf32, #tpu.memory_space<vmem>>, vector<1x32xf32>
    %c0_13 = arith.constant 0 : index
    %c0_14 = arith.constant 0 : index
    %c0_15 = arith.constant 0 : index
    %11 = vector.load %arg2[%c0_13, %c0_14, %c0_15] : memref<2x8x32xf32, #tpu.memory_space<vmem>>, vector<1x8x32xf32>
    %12 = vector.shape_cast %11 : vector<1x8x32xf32> to vector<8x32xf32>
    %c0_16 = arith.constant 0 : index
    %c0_17 = arith.constant 0 : index
    %c0_18 = arith.constant 0 : index
    %13 = vector.load %arg3[%c0_16, %c0_17, %c0_18] : memref<2x8x32xf32, #tpu.memory_space<vmem>>, vector<1x8x32xf32>
    %14 = vector.shape_cast %13 : vector<1x8x32xf32> to vector<8x32xf32>
    %cst_19 = arith.constant dense<0.000000e+00> : vector<32x8xf32>
    %15 = tpu.matmul %7, %12, %cst_19 {dimension_numbers = #tpu.dot_dimension_numbers<[1], [1], [0], [0], [0, 0, 1, 0], [], []>} : vector<32x32xf32>, vector<8x32xf32>, vector<32x8xf32> -> vector<32x8xf32>
    %16 = vector.extract_strided_slice %0 {offsets = [0, 0], sizes = [8, 32], strides = [1, 1]} : vector<16x32xf32> to vector<8x32xf32>
    %17 = vector.broadcast %8 : vector<1x32xf32> to vector<8x32xf32>
    %18 = arith.addf %16, %17 : vector<8x32xf32>
    %cst_20 = arith.constant dense<0.000000e+00> : vector<8x8xf32>
    %19 = tpu.matmul %18, %12, %cst_20 {dimension_numbers = #tpu.dot_dimension_numbers<[1], [1], [0], [0], [0, 0, 1, 0], [], []>} : vector<8x32xf32>, vector<8x32xf32>, vector<8x8xf32> -> vector<8x8xf32>
    %cst_21 = arith.constant 0.707106769 : f32
    %20 = vector.broadcast %cst_21 : f32 to vector<32x8xf32>
    %21 = arith.mulf %15, %20 : vector<32x8xf32>
    %cst_22 = arith.constant 0.707106769 : f32
    %22 = vector.broadcast %cst_22 : f32 to vector<8x8xf32>
    %23 = arith.mulf %19, %22 : vector<8x8xf32>
    %cst_23 = arith.constant dense<0.000000e+00> : vector<8x32xf32>
    %24 = tpu.matmul %14, %9, %cst_23 {dimension_numbers = #tpu.dot_dimension_numbers<[1], [0], [0], [1], [0, 0, 1, 1], [], []>} : vector<8x32xf32>, vector<32x32xf32>, vector<8x32xf32> -> vector<8x32xf32>
    %c1 = arith.constant 1 : index
    %c0_24 = arith.constant 0 : index
    %c0_25 = arith.constant 0 : index
    %25 = vector.load %arg2[%c1, %c0_24, %c0_25] : memref<2x8x32xf32, #tpu.memory_space<vmem>>, vector<1x8x32xf32>
    %26 = vector.shape_cast %25 : vector<1x8x32xf32> to vector<8x32xf32>
    %c1_26 = arith.constant 1 : index
    %c0_27 = arith.constant 0 : index
    %c0_28 = arith.constant 0 : index
    %27 = vector.load %arg3[%c1_26, %c0_27, %c0_28] : memref<2x8x32xf32, #tpu.memory_space<vmem>>, vector<1x8x32xf32>
    %28 = vector.shape_cast %27 : vector<1x8x32xf32> to vector<8x32xf32>
    %cst_29 = arith.constant dense<0.000000e+00> : vector<32x8xf32>
    %29 = tpu.matmul %7, %26, %cst_29 {dimension_numbers = #tpu.dot_dimension_numbers<[1], [1], [0], [0], [0, 0, 1, 0], [], []>} : vector<32x32xf32>, vector<8x32xf32>, vector<32x8xf32> -> vector<32x8xf32>
    %30 = vector.extract_strided_slice %0 {offsets = [8, 0], sizes = [8, 32], strides = [1, 1]} : vector<16x32xf32> to vector<8x32xf32>
    %31 = vector.broadcast %8 : vector<1x32xf32> to vector<8x32xf32>
    %32 = arith.addf %30, %31 : vector<8x32xf32>
    %cst_30 = arith.constant dense<0.000000e+00> : vector<8x8xf32>
    %33 = tpu.matmul %32, %26, %cst_30 {dimension_numbers = #tpu.dot_dimension_numbers<[1], [1], [0], [0], [0, 0, 1, 0], [], []>} : vector<8x32xf32>, vector<8x32xf32>, vector<8x8xf32> -> vector<8x8xf32>
    %cst_31 = arith.constant 0.707106769 : f32
    %34 = vector.broadcast %cst_31 : f32 to vector<32x8xf32>
    %35 = arith.mulf %29, %34 : vector<32x8xf32>
    %cst_32 = arith.constant 0.707106769 : f32
    %36 = vector.broadcast %cst_32 : f32 to vector<8x8xf32>
    %37 = arith.mulf %33, %36 : vector<8x8xf32>
    %cst_33 = arith.constant dense<0.000000e+00> : vector<8x32xf32>
    %38 = tpu.matmul %28, %9, %cst_33 {dimension_numbers = #tpu.dot_dimension_numbers<[1], [0], [0], [1], [0, 0, 1, 1], [], []>} : vector<8x32xf32>, vector<32x32xf32>, vector<8x32xf32> -> vector<8x32xf32>
    %39 = tpu.iota {dimensions = array<i32: 0>} : vector<16x1xi32>
    %c8_i32 = arith.constant 8 : i32
    %c0_i32 = arith.constant 0 : i32
    %40 = arith.cmpi eq, %c8_i32, %c0_i32 : i32
    %c1_i32 = arith.constant 1 : i32
    %41 = arith.select %40, %c1_i32, %c8_i32 : i32
    %42 = vector.broadcast %41 : i32 to vector<16x1xi32>
    %43 = arith.remsi %39, %42 : vector<16x1xi32>
    %c0_i32_34 = arith.constant 0 : i32
    %44 = vector.broadcast %c0_i32_34 : i32 to vector<16x1xi32>
    %45 = arith.cmpi ne, %43, %44 : vector<16x1xi32>
    %c0_i32_35 = arith.constant 0 : i32
    %46 = vector.broadcast %c0_i32_35 : i32 to vector<16x1xi32>
    %47 = arith.cmpi slt, %43, %46 : vector<16x1xi32>
    %c0_i32_36 = arith.constant 0 : i32
    %48 = arith.cmpi slt, %41, %c0_i32_36 : i32
    %49 = vector.broadcast %48 : i1 to vector<16x1xi1>
    %50 = vector.broadcast %49 : vector<16x1xi1> to vector<16x1xi1>
    %51 = arith.xori %47, %50 : vector<16x1xi1>
    %52 = arith.andi %51, %45 : vector<16x1xi1>
    %53 = vector.broadcast %41 : i32 to vector<16x1xi32>
    %54 = arith.addi %43, %53 : vector<16x1xi32>
    %55 = arith.select %52, %54, %43 : vector<16x1xi1>, vector<16x1xi32>
    %cst_37 = arith.constant 0.000000e+00 : f32
    %56 = vector.broadcast %cst_37 : f32 to vector<2x32xf32>
    %57 = tpu.concatenate %56, %6 in 0 : vector<2x32xf32>, vector<16x32xf32> -> vector<18x32xf32>
    %58 = vector.extract_strided_slice %57 {offsets = [0, 0], sizes = [16, 32], strides = [1, 1]} : vector<18x32xf32> to vector<16x32xf32>
    %c2_i32 = arith.constant 2 : i32
    %59 = vector.broadcast %c2_i32 : i32 to vector<16x1xi32>
    %60 = arith.cmpi slt, %55, %59 : vector<16x1xi32>
    %cst_38 = arith.constant 0.000000e+00 : f32
    %61 = vector.shape_cast %60 : vector<16x1xi1> to vector<16x1xi1>
    %62 = vector.broadcast %61 : vector<16x1xi1> to vector<16x32xi1>
    %63 = vector.broadcast %cst_38 : f32 to vector<16x32xf32>
    %64 = arith.select %62, %63, %58 : vector<16x32xi1>, vector<16x32xf32>
    %65 = vector.extract_strided_slice %57 {offsets = [1, 0], sizes = [16, 32], strides = [1, 1]} : vector<18x32xf32> to vector<16x32xf32>
    %c1_i32_39 = arith.constant 1 : i32
    %66 = vector.broadcast %c1_i32_39 : i32 to vector<16x1xi32>
    %67 = arith.cmpi slt, %55, %66 : vector<16x1xi32>
    %cst_40 = arith.constant 0.000000e+00 : f32
    %68 = vector.shape_cast %67 : vector<16x1xi1> to vector<16x1xi1>
    %69 = vector.broadcast %68 : vector<16x1xi1> to vector<16x32xi1>
    %70 = vector.broadcast %cst_40 : f32 to vector<16x32xf32>
    %71 = arith.select %69, %70, %65 : vector<16x32xi1>, vector<16x32xf32>
    %72 = tpu.concatenate %64, %71, %6 in 1 : vector<16x32xf32>, vector<16x32xf32>, vector<16x32xf32> -> vector<16x96xf32>
    %73 = arith.truncf %72 : vector<16x96xf32> to vector<16x96xbf16>
    %c0_41 = arith.constant 0 : index
    %c0_42 = arith.constant 0 : index
    %c0_43 = arith.constant 0 : index
    %74 = vector.load %arg6[%c0_41, %c0_42, %c0_43] : memref<2x96x32xbf16, #tpu.memory_space<vmem>>, vector<1x96x32xbf16>
    %75 = vector.shape_cast %74 : vector<1x96x32xbf16> to vector<96x32xbf16>
    %cst_44 = arith.constant dense<0.000000e+00> : vector<16x32xf32>
    %76 = tpu.matmul %73, %75, %cst_44 {dimension_numbers = #tpu.dot_dimension_numbers<[1], [0], [0], [1], [0, 0, 1, 1], [], []>} : vector<16x96xbf16>, vector<96x32xbf16>, vector<16x32xf32> -> vector<16x32xf32>
    %c0_45 = arith.constant 0 : index
    %c0_46 = arith.constant 0 : index
    %c0_47 = arith.constant 0 : index
    %77 = vector.load %arg8[%c0_45, %c0_46, %c0_47] : memref<2x16x32xf32, #tpu.memory_space<vmem>>, vector<1x16x32xf32>
    %78 = vector.shape_cast %77 : vector<1x16x32xf32> to vector<16x32xf32>
    %79 = arith.addf %76, %78 : vector<16x32xf32>
    %c0_48 = arith.constant 0 : index
    %c0_49 = arith.constant 0 : index
    %c0_50 = arith.constant 0 : index
    %80 = vector.load %arg7[%c0_48, %c0_49, %c0_50] : memref<2x96x32xbf16, #tpu.memory_space<vmem>>, vector<1x96x32xbf16>
    %81 = vector.shape_cast %80 : vector<1x96x32xbf16> to vector<96x32xbf16>
    %cst_51 = arith.constant dense<0.000000e+00> : vector<16x32xf32>
    %82 = tpu.matmul %73, %81, %cst_51 {dimension_numbers = #tpu.dot_dimension_numbers<[1], [0], [0], [1], [0, 0, 1, 1], [], []>} : vector<16x96xbf16>, vector<96x32xbf16>, vector<16x32xf32> -> vector<16x32xf32>
    %c0_52 = arith.constant 0 : index
    %c0_53 = arith.constant 0 : index
    %c0_54 = arith.constant 0 : index
    %83 = vector.load %arg9[%c0_52, %c0_53, %c0_54] : memref<2x16x32xf32, #tpu.memory_space<vmem>>, vector<1x16x32xf32>
    %84 = vector.shape_cast %83 : vector<1x16x32xf32> to vector<16x32xf32>
    %85 = arith.addf %82, %84 : vector<16x32xf32>
    %86 = arith.negf %85 : vector<16x32xf32>
    %87 = math.exp %86 : vector<16x32xf32>
    %cst_55 = arith.constant 1.000000e+00 : f32
    %88 = vector.broadcast %cst_55 : f32 to vector<16x32xf32>
    %89 = arith.addf %88, %87 : vector<16x32xf32>
    %90 = arith.divf %88, %89 : vector<16x32xf32>
    %91 = arith.mulf %79, %90 : vector<16x32xf32>
    %92 = vector.extract_strided_slice %91 {offsets = [0, 0], sizes = [8, 32], strides = [1, 1]} : vector<16x32xf32> to vector<8x32xf32>
    %cst_56 = arith.constant dense<0.000000e+00> : vector<8x8xf32>
    %93 = tpu.matmul %92, %21, %cst_56 {dimension_numbers = #tpu.dot_dimension_numbers<[1], [0], [0], [1], [0, 0, 1, 1], [], []>} : vector<8x32xf32>, vector<32x8xf32>, vector<8x8xf32> -> vector<8x8xf32>
    %94 = arith.addf %93, %23 : vector<8x8xf32>
    %cst_57 = arith.constant dense<0xFF800000> : vector<8xf32>
    %95 = vector.multi_reduction <maximumf>, %94, %cst_57 [1] : vector<8x8xf32> to vector<8xf32>
    %96 = vector.shape_cast %95 : vector<8xf32> to vector<8x1xf32>
    %97 = vector.broadcast %96 : vector<8x1xf32> to vector<8x8xf32>
    %98 = arith.subf %94, %97 : vector<8x8xf32>
    %99 = math.exp %98 : vector<8x8xf32>
    %cst_58 = arith.constant dense<0.000000e+00> : vector<8xf32>
    %100 = vector.multi_reduction <add>, %99, %cst_58 [1] : vector<8x8xf32> to vector<8xf32>
    %101 = vector.shape_cast %100 : vector<8xf32> to vector<8x1xf32>
    %102 = tpu.reciprocal %101 {approx = true} : vector<8x1xf32> -> vector<8x1xf32>
    %103 = vector.broadcast %102 : vector<8x1xf32> to vector<8x8xf32>
    %104 = arith.mulf %99, %103 : vector<8x8xf32>
    %cst_59 = arith.constant dense<0.000000e+00> : vector<8x32xf32>
    %105 = tpu.matmul %104, %24, %cst_59 {dimension_numbers = #tpu.dot_dimension_numbers<[1], [0], [0], [1], [0, 0, 1, 1], [], []>} : vector<8x8xf32>, vector<8x32xf32>, vector<8x32xf32> -> vector<8x32xf32>
    %106 = vector.broadcast %10 : vector<1x32xf32> to vector<8x32xf32>
    %107 = arith.addf %105, %106 : vector<8x32xf32>
    %108 = vector.extract_strided_slice %91 {offsets = [8, 0], sizes = [8, 32], strides = [1, 1]} : vector<16x32xf32> to vector<8x32xf32>
    %cst_60 = arith.constant dense<0.000000e+00> : vector<8x8xf32>
    %109 = tpu.matmul %108, %35, %cst_60 {dimension_numbers = #tpu.dot_dimension_numbers<[1], [0], [0], [1], [0, 0, 1, 1], [], []>} : vector<8x32xf32>, vector<32x8xf32>, vector<8x8xf32> -> vector<8x8xf32>
    %110 = arith.addf %109, %37 : vector<8x8xf32>
    %cst_61 = arith.constant dense<0xFF800000> : vector<8xf32>
    %111 = vector.multi_reduction <maximumf>, %110, %cst_61 [1] : vector<8x8xf32> to vector<8xf32>
    %112 = vector.shape_cast %111 : vector<8xf32> to vector<8x1xf32>
    %113 = vector.broadcast %112 : vector<8x1xf32> to vector<8x8xf32>
    %114 = arith.subf %110, %113 : vector<8x8xf32>
    %115 = math.exp %114 : vector<8x8xf32>
    %cst_62 = arith.constant dense<0.000000e+00> : vector<8xf32>
    %116 = vector.multi_reduction <add>, %115, %cst_62 [1] : vector<8x8xf32> to vector<8xf32>
    %117 = vector.shape_cast %116 : vector<8xf32> to vector<8x1xf32>
    %118 = tpu.reciprocal %117 {approx = true} : vector<8x1xf32> -> vector<8x1xf32>
    %119 = vector.broadcast %118 : vector<8x1xf32> to vector<8x8xf32>
    %120 = arith.mulf %115, %119 : vector<8x8xf32>
    %cst_63 = arith.constant dense<0.000000e+00> : vector<8x32xf32>
    %121 = tpu.matmul %120, %38, %cst_63 {dimension_numbers = #tpu.dot_dimension_numbers<[1], [0], [0], [1], [0, 0, 1, 1], [], []>} : vector<8x8xf32>, vector<8x32xf32>, vector<8x32xf32> -> vector<8x32xf32>
    %122 = vector.broadcast %10 : vector<1x32xf32> to vector<8x32xf32>
    %123 = arith.addf %121, %122 : vector<8x32xf32>
    %124 = tpu.concatenate %107, %123 in 0 : vector<8x32xf32>, vector<8x32xf32> -> vector<16x32xf32>
    %125 = arith.addf %91, %124 : vector<16x32xf32>
    %cst_64 = arith.constant 0.707106769 : f32
    %126 = vector.broadcast %cst_64 : f32 to vector<16x32xf32>
    %127 = arith.mulf %125, %126 : vector<16x32xf32>
    %128 = arith.addf %127, %6 : vector<16x32xf32>
    %cst_65 = arith.constant 0.707106769 : f32
    %129 = vector.broadcast %cst_65 : f32 to vector<16x32xf32>
    %130 = arith.mulf %128, %129 : vector<16x32xf32>
    %131 = tpu.concatenate %56, %130 in 0 : vector<2x32xf32>, vector<16x32xf32> -> vector<18x32xf32>
    %132 = vector.extract_strided_slice %131 {offsets = [0, 0], sizes = [16, 32], strides = [1, 1]} : vector<18x32xf32> to vector<16x32xf32>
    %c2_i32_66 = arith.constant 2 : i32
    %133 = vector.broadcast %c2_i32_66 : i32 to vector<16x1xi32>
    %134 = arith.cmpi slt, %55, %133 : vector<16x1xi32>
    %cst_67 = arith.constant 0.000000e+00 : f32
    %135 = vector.shape_cast %134 : vector<16x1xi1> to vector<16x1xi1>
    %136 = vector.broadcast %135 : vector<16x1xi1> to vector<16x32xi1>
    %137 = vector.broadcast %cst_67 : f32 to vector<16x32xf32>
    %138 = arith.select %136, %137, %132 : vector<16x32xi1>, vector<16x32xf32>
    %139 = vector.extract_strided_slice %131 {offsets = [1, 0], sizes = [16, 32], strides = [1, 1]} : vector<18x32xf32> to vector<16x32xf32>
    %c1_i32_68 = arith.constant 1 : i32
    %140 = vector.broadcast %c1_i32_68 : i32 to vector<16x1xi32>
    %141 = arith.cmpi slt, %55, %140 : vector<16x1xi32>
    %cst_69 = arith.constant 0.000000e+00 : f32
    %142 = vector.shape_cast %141 : vector<16x1xi1> to vector<16x1xi1>
    %143 = vector.broadcast %142 : vector<16x1xi1> to vector<16x32xi1>
    %144 = vector.broadcast %cst_69 : f32 to vector<16x32xf32>
    %145 = arith.select %143, %144, %139 : vector<16x32xi1>, vector<16x32xf32>
    %146 = tpu.concatenate %138, %145, %130 in 1 : vector<16x32xf32>, vector<16x32xf32>, vector<16x32xf32> -> vector<16x96xf32>
    %147 = arith.truncf %146 : vector<16x96xf32> to vector<16x96xbf16>
    %c1_70 = arith.constant 1 : index
    %c0_71 = arith.constant 0 : index
    %c0_72 = arith.constant 0 : index
    %148 = vector.load %arg6[%c1_70, %c0_71, %c0_72] : memref<2x96x32xbf16, #tpu.memory_space<vmem>>, vector<1x96x32xbf16>
    %149 = vector.shape_cast %148 : vector<1x96x32xbf16> to vector<96x32xbf16>
    %cst_73 = arith.constant dense<0.000000e+00> : vector<16x32xf32>
    %150 = tpu.matmul %147, %149, %cst_73 {dimension_numbers = #tpu.dot_dimension_numbers<[1], [0], [0], [1], [0, 0, 1, 1], [], []>} : vector<16x96xbf16>, vector<96x32xbf16>, vector<16x32xf32> -> vector<16x32xf32>
    %c1_74 = arith.constant 1 : index
    %c0_75 = arith.constant 0 : index
    %c0_76 = arith.constant 0 : index
    %151 = vector.load %arg8[%c1_74, %c0_75, %c0_76] : memref<2x16x32xf32, #tpu.memory_space<vmem>>, vector<1x16x32xf32>
    %152 = vector.shape_cast %151 : vector<1x16x32xf32> to vector<16x32xf32>
    %153 = arith.addf %150, %152 : vector<16x32xf32>
    %c1_77 = arith.constant 1 : index
    %c0_78 = arith.constant 0 : index
    %c0_79 = arith.constant 0 : index
    %154 = vector.load %arg7[%c1_77, %c0_78, %c0_79] : memref<2x96x32xbf16, #tpu.memory_space<vmem>>, vector<1x96x32xbf16>
    %155 = vector.shape_cast %154 : vector<1x96x32xbf16> to vector<96x32xbf16>
    %cst_80 = arith.constant dense<0.000000e+00> : vector<16x32xf32>
    %156 = tpu.matmul %147, %155, %cst_80 {dimension_numbers = #tpu.dot_dimension_numbers<[1], [0], [0], [1], [0, 0, 1, 1], [], []>} : vector<16x96xbf16>, vector<96x32xbf16>, vector<16x32xf32> -> vector<16x32xf32>
    %c1_81 = arith.constant 1 : index
    %c0_82 = arith.constant 0 : index
    %c0_83 = arith.constant 0 : index
    %157 = vector.load %arg9[%c1_81, %c0_82, %c0_83] : memref<2x16x32xf32, #tpu.memory_space<vmem>>, vector<1x16x32xf32>
    %158 = vector.shape_cast %157 : vector<1x16x32xf32> to vector<16x32xf32>
    %159 = arith.addf %156, %158 : vector<16x32xf32>
    %160 = arith.negf %159 : vector<16x32xf32>
    %161 = math.exp %160 : vector<16x32xf32>
    %cst_84 = arith.constant 1.000000e+00 : f32
    %162 = vector.broadcast %cst_84 : f32 to vector<16x32xf32>
    %163 = arith.addf %162, %161 : vector<16x32xf32>
    %164 = arith.divf %162, %163 : vector<16x32xf32>
    %165 = arith.mulf %153, %164 : vector<16x32xf32>
    %166 = vector.extract_strided_slice %165 {offsets = [0, 0], sizes = [8, 32], strides = [1, 1]} : vector<16x32xf32> to vector<8x32xf32>
    %cst_85 = arith.constant dense<0.000000e+00> : vector<8x8xf32>
    %167 = tpu.matmul %166, %21, %cst_85 {dimension_numbers = #tpu.dot_dimension_numbers<[1], [0], [0], [1], [0, 0, 1, 1], [], []>} : vector<8x32xf32>, vector<32x8xf32>, vector<8x8xf32> -> vector<8x8xf32>
    %168 = arith.addf %167, %23 : vector<8x8xf32>
    %cst_86 = arith.constant dense<0xFF800000> : vector<8xf32>
    %169 = vector.multi_reduction <maximumf>, %168, %cst_86 [1] : vector<8x8xf32> to vector<8xf32>
    %170 = vector.shape_cast %169 : vector<8xf32> to vector<8x1xf32>
    %171 = vector.broadcast %170 : vector<8x1xf32> to vector<8x8xf32>
    %172 = arith.subf %168, %171 : vector<8x8xf32>
    %173 = math.exp %172 : vector<8x8xf32>
    %cst_87 = arith.constant dense<0.000000e+00> : vector<8xf32>
    %174 = vector.multi_reduction <add>, %173, %cst_87 [1] : vector<8x8xf32> to vector<8xf32>
    %175 = vector.shape_cast %174 : vector<8xf32> to vector<8x1xf32>
    %176 = tpu.reciprocal %175 {approx = true} : vector<8x1xf32> -> vector<8x1xf32>
    %177 = vector.broadcast %176 : vector<8x1xf32> to vector<8x8xf32>
    %178 = arith.mulf %173, %177 : vector<8x8xf32>
    %cst_88 = arith.constant dense<0.000000e+00> : vector<8x32xf32>
    %179 = tpu.matmul %178, %24, %cst_88 {dimension_numbers = #tpu.dot_dimension_numbers<[1], [0], [0], [1], [0, 0, 1, 1], [], []>} : vector<8x8xf32>, vector<8x32xf32>, vector<8x32xf32> -> vector<8x32xf32>
    %180 = vector.broadcast %10 : vector<1x32xf32> to vector<8x32xf32>
    %181 = arith.addf %179, %180 : vector<8x32xf32>
    %182 = vector.extract_strided_slice %165 {offsets = [8, 0], sizes = [8, 32], strides = [1, 1]} : vector<16x32xf32> to vector<8x32xf32>
    %cst_89 = arith.constant dense<0.000000e+00> : vector<8x8xf32>
    %183 = tpu.matmul %182, %35, %cst_89 {dimension_numbers = #tpu.dot_dimension_numbers<[1], [0], [0], [1], [0, 0, 1, 1], [], []>} : vector<8x32xf32>, vector<32x8xf32>, vector<8x8xf32> -> vector<8x8xf32>
    %184 = arith.addf %183, %37 : vector<8x8xf32>
    %cst_90 = arith.constant dense<0xFF800000> : vector<8xf32>
    %185 = vector.multi_reduction <maximumf>, %184, %cst_90 [1] : vector<8x8xf32> to vector<8xf32>
    %186 = vector.shape_cast %185 : vector<8xf32> to vector<8x1xf32>
    %187 = vector.broadcast %186 : vector<8x1xf32> to vector<8x8xf32>
    %188 = arith.subf %184, %187 : vector<8x8xf32>
    %189 = math.exp %188 : vector<8x8xf32>
    %cst_91 = arith.constant dense<0.000000e+00> : vector<8xf32>
    %190 = vector.multi_reduction <add>, %189, %cst_91 [1] : vector<8x8xf32> to vector<8xf32>
    %191 = vector.shape_cast %190 : vector<8xf32> to vector<8x1xf32>
    %192 = tpu.reciprocal %191 {approx = true} : vector<8x1xf32> -> vector<8x1xf32>
    %193 = vector.broadcast %192 : vector<8x1xf32> to vector<8x8xf32>
    %194 = arith.mulf %189, %193 : vector<8x8xf32>
    %cst_92 = arith.constant dense<0.000000e+00> : vector<8x32xf32>
    %195 = tpu.matmul %194, %38, %cst_92 {dimension_numbers = #tpu.dot_dimension_numbers<[1], [0], [0], [1], [0, 0, 1, 1], [], []>} : vector<8x8xf32>, vector<8x32xf32>, vector<8x32xf32> -> vector<8x32xf32>
    %196 = vector.broadcast %10 : vector<1x32xf32> to vector<8x32xf32>
    %197 = arith.addf %195, %196 : vector<8x32xf32>
    %198 = tpu.concatenate %178, %194 in 0 : vector<8x8xf32>, vector<8x8xf32> -> vector<16x8xf32>
    %199 = tpu.concatenate %181, %197 in 0 : vector<8x32xf32>, vector<8x32xf32> -> vector<16x32xf32>
    %200 = arith.addf %165, %199 : vector<16x32xf32>
    %cst_93 = arith.constant 0.707106769 : f32
    %201 = vector.broadcast %cst_93 : f32 to vector<16x32xf32>
    %202 = arith.mulf %200, %201 : vector<16x32xf32>
    %203 = arith.addf %202, %130 : vector<16x32xf32>
    %cst_94 = arith.constant 0.707106769 : f32
    %204 = vector.broadcast %cst_94 : f32 to vector<16x32xf32>
    %205 = arith.mulf %203, %204 : vector<16x32xf32>
    %206 = arith.truncf %205 : vector<16x32xf32> to vector<16x32xbf16>
    %c0_95 = arith.constant 0 : index
    %c0_96 = arith.constant 0 : index
    %207 = vector.load %arg14[%c0_95, %c0_96] : memref<32x128xbf16, #tpu.memory_space<vmem>>, vector<32x128xbf16>
    %cst_97 = arith.constant dense<0.000000e+00> : vector<16x128xf32>
    %208 = tpu.matmul %206, %207, %cst_97 {dimension_numbers = #tpu.dot_dimension_numbers<[1], [0], [0], [1], [0, 0, 1, 1], [], []>} : vector<16x32xbf16>, vector<32x128xbf16>, vector<16x128xf32> -> vector<16x128xf32>
    %c0_98 = arith.constant 0 : index
    %c0_99 = arith.constant 0 : index
    %209 = vector.load %arg15[%c0_98, %c0_99] : memref<1x128xf32, #tpu.memory_space<vmem>>, vector<1x128xf32>
    %210 = vector.broadcast %209 : vector<1x128xf32> to vector<16x128xf32>
    %211 = arith.addf %208, %210 : vector<16x128xf32>
    %c0_100 = arith.constant 0 : index
    %c0_101 = arith.constant 0 : index
    %212 = vector.load %arg16[%c0_100, %c0_101] : memref<16x128xf32, #tpu.memory_space<vmem>>, vector<16x128xf32>
    tpu.vector_store %arg16[%c0_100, %c0_101], %211 {strides = array<i32>} : memref<16x128xf32, #tpu.memory_space<vmem>>, vector<16x128xf32>,
    %c0_102 = arith.constant 0 : index
    %c0_103 = arith.constant 0 : index
    %213 = vector.load %arg17[%c0_102, %c0_103] : memref<16x8xf32, #tpu.memory_space<vmem>>, vector<16x8xf32>
    tpu.vector_store %arg17[%c0_102, %c0_103], %198 {strides = array<i32>} : memref<16x8xf32, #tpu.memory_space<vmem>>, vector<16x8xf32>,
    return
  }
  func.func @transform_0(%arg0: i32) -> (i32, i32) {
    %c0_i32 = arith.constant 0 : i32
    %c0_i32_0 = arith.constant 0 : i32
    %c0_i32_1 = arith.constant 0 : i32
    return %c0_i32, %c0_i32_0 : i32, i32
  }
  func.func @transform_1(%arg0: i32) -> (i32, i32, i32) {
    %c0_i32 = arith.constant 0 : i32
    %c0_i32_0 = arith.constant 0 : i32
    %c0_i32_1 = arith.constant 0 : i32
    %c0_i32_2 = arith.constant 0 : i32
    return %c0_i32, %c0_i32_0, %c0_i32_1 : i32, i32, i32
  }
  func.func @transform_2(%arg0: i32) -> (i32, i32, i32) {
    %c0_i32 = arith.constant 0 : i32
    %c0_i32_0 = arith.constant 0 : i32
    %c0_i32_1 = arith.constant 0 : i32
    %c0_i32_2 = arith.constant 0 : i32
    return %c0_i32, %c0_i32_0, %c0_i32_1 : i32, i32, i32
  }
  func.func @transform_3(%arg0: i32) -> (i32, i32) {
    %c0_i32 = arith.constant 0 : i32
    %c0_i32_0 = arith.constant 0 : i32
    %c0_i32_1 = arith.constant 0 : i32
    return %c0_i32, %c0_i32_0 : i32, i32
  }
  func.func @transform_4(%arg0: i32) -> (i32, i32) {
    %c0_i32 = arith.constant 0 : i32
    %c0_i32_0 = arith.constant 0 : i32
    %c0_i32_1 = arith.constant 0 : i32
    return %c0_i32, %c0_i32_0 : i32, i32
  }
  func.func @transform_5(%arg0: i32) -> (i32, i32, i32) {
    %c0_i32 = arith.constant 0 : i32
    %c0_i32_0 = arith.constant 0 : i32
    %c0_i32_1 = arith.constant 0 : i32
    %c0_i32_2 = arith.constant 0 : i32
    return %c0_i32, %c0_i32_0, %c0_i32_1 : i32, i32, i32
  }
  func.func @transform_6(%arg0: i32) -> (i32, i32, i32) {
    %c0_i32 = arith.constant 0 : i32
    %c0_i32_0 = arith.constant 0 : i32
    %c0_i32_1 = arith.constant 0 : i32
    %c0_i32_2 = arith.constant 0 : i32
    return %c0_i32, %c0_i32_0, %c0_i32_1 : i32, i32, i32
  }
  func.func @transform_7(%arg0: i32) -> (i32, i32, i32) {
    %c0_i32 = arith.constant 0 : i32
    %c0_i32_0 = arith.constant 0 : i32
    %c0_i32_1 = arith.constant 0 : i32
    %c0_i32_2 = arith.constant 0 : i32
    return %c0_i32, %c0_i32_0, %c0_i32_1 : i32, i32, i32
  }
  func.func @transform_8(%arg0: i32) -> (i32, i32, i32) {
    %c0_i32 = arith.constant 0 : i32
    %c0_i32_0 = arith.constant 0 : i32
    %c0_i32_1 = arith.constant 0 : i32
    %c0_i32_2 = arith.constant 0 : i32
    return %c0_i32, %c0_i32_0, %c0_i32_1 : i32, i32, i32
  }
  func.func @transform_9(%arg0: i32) -> (i32, i32) {
    %c0_i32 = arith.constant 0 : i32
    %c0_i32_0 = arith.constant 0 : i32
    %c0_i32_1 = arith.constant 0 : i32
    return %c0_i32, %c0_i32_0 : i32, i32
  }
  func.func @transform_10(%arg0: i32) -> (i32, i32) {
    %c0_i32 = arith.constant 0 : i32
    %c0_i32_0 = arith.constant 0 : i32
    %c0_i32_1 = arith.constant 0 : i32
    return %c0_i32, %c0_i32_0 : i32, i32
  }
  func.func @transform_11(%arg0: i32) -> (i32, i32) {
    %c0_i32 = arith.constant 0 : i32
    %c0_i32_0 = arith.constant 0 : i32
    %c0_i32_1 = arith.constant 0 : i32
    return %c0_i32, %c0_i32_0 : i32, i32
  }
  func.func @transform_12(%arg0: i32) -> (i32, i32) {
    %c0_i32 = arith.constant 0 : i32
    %c0_i32_0 = arith.constant 0 : i32
    %c0_i32_1 = arith.constant 0 : i32
    return %c0_i32, %c0_i32_0 : i32, i32
  }
  func.func @transform_13(%arg0: i32) -> (i32, i32) {
    %c0_i32 = arith.constant 0 : i32
    %c0_i32_0 = arith.constant 0 : i32
    %c0_i32_1 = arith.constant 0 : i32
    return %c0_i32, %c0_i32_0 : i32, i32
  }
  func.func @transform_14(%arg0: i32) -> (i32, i32) {
    %c0_i32 = arith.constant 0 : i32
    %c0_i32_0 = arith.constant 0 : i32
    %c0_i32_1 = arith.constant 0 : i32
    return %c0_i32, %c0_i32_0 : i32, i32
  }
  func.func @transform_15(%arg0: i32) -> (i32, i32) {
    %c0_i32 = arith.constant 0 : i32
    %c0_i32_0 = arith.constant 0 : i32
    %c0_i32_1 = arith.constant 0 : i32
    return %c0_i32, %c0_i32_0 : i32, i32
  }
  func.func @transform_16(%arg0: i32) -> (i32, i32) {
    %c0_i32 = arith.constant 0 : i32
    %c0_i32_0 = arith.constant 0 : i32
    %c0_i32_1 = arith.constant 0 : i32
    return %c0_i32, %c0_i32_0 : i32, i32
  }
}

</mosaic_0001>

<bundles_post_ra>
// kernel: tpu_custom_call.1
= control target key start
LH: loop header
LB: loop body
LE: loop exit
PB: predicated region body
PF: predicated region fallthrough
CT: control target
= control target key end

     0   :  { %s1790_s0 = inlined_call_operand.vmem [shape: f32[16,32], index: 0, kind: input, shape index: {}]   ;;  %s1791_s1 = inlined_call_operand.vmem [shape: f32[2,8,32], index: 1, kind: input, shape index: {}]   ;;  %s1792_s2 = inlined_call_operand.vmem [shape: f32[2,8,32], index: 2, kind: input, shape index: {}]   ;;  %s1793_s3 = inlined_call_operand.vmem [shape: bf16[32,32], index: 3, kind: input, shape index: {}]   ;;  %s1794_s4 = inlined_call_operand.vmem [shape: f32[1,32], index: 4, kind: input, shape index: {}]   ;;  %s1795_s5 = inlined_call_operand.vmem [shape: bf16[2,96,32], index: 5, kind: input, shape index: {}]   ;;  %s1796_s6 = inlined_call_operand.vmem [shape: bf16[2,96,32], index: 6, kind: input, shape index: {}]   ;;  %s1797_s7 = inlined_call_operand.vmem [shape: f32[2,16,32], index: 7, kind: input, shape index: {}]   ;;  %s1798_s8 = inlined_call_operand.vmem [shape: f32[2,16,32], index: 8, kind: input, shape index: {}]   ;;  %s1799_s9 = inlined_call_operand.vmem [shape: f32[32,32], index: 9, kind: input, shape index: {}]   ;;  %s1800_s10 = inlined_call_operand.vmem [shape: f32[1,32], index: 10, kind: input, shape index: {}]   ;;  %s1801_s11 = inlined_call_operand.vmem [shape: f32[32,32], index: 11, kind: input, shape index: {}]   ;;  %s1802_s12 = inlined_call_operand.vmem [shape: f32[1,32], index: 12, kind: input, shape index: {}]   ;;  %s1803_s13 = inlined_call_operand.vmem [shape: bf16[32,128], index: 13, kind: input, shape index: {}]   ;;  %s1804_s14 = inlined_call_operand.vmem [shape: f32[1,128], index: 14, kind: input, shape index: {}]   ;;  %s1805_s15 = inlined_call_operand.hbm [shape: f32[16,128], index: 15, kind: output, shape index: {0}]   ;;  %s1806_s16 = inlined_call_operand.vmem [shape: f32[16,8], index: 16, kind: output, shape index: {1}]  }
   0x1   :  { %1808 = sst [smem:[#allocation5_spill]] %s1790_s0 }
   0x2   :  { %v1250_v0 = vld [vmem:[%s1793_s3 + $0x8] sm:$0xff]  ;;  %v1249_v1 = vld [vmem:[%s1793_s3] sm:$0xff]  ;;  %s1809_s27 = sld [smem:[#allocation5_spill]] }
   0x3   :  { %87 = vmatpush.bf16.msra.mxu0 %v1250_v0 }
   0x8   :  { %v54_v2 = vld [vmem:[%s1809_s27] sm:$0xff]  ;;  %v55_v3 = vld [vmem:[%s1809_s27 + $0x8] sm:$0xff] }
   0x9   :  { %22 = vsyncpa [#allocation3], 0  ;;  %v56_v4 = vpack.c.bf16 %v55_v3, %v54_v2  ;;  %88 = vmatpush.bf16.msra.mxu0 %v1249_v1  ;;  %vm77_vm0 = vcmask 261120   ;;  %v105_v5 = vld [vmem:[%s1791_s1] sm:$0xff]  ;;  %v1090_v6 = vld [vmem:[%s1791_s1 + $0x8] sm:$0xff]  ;;  %v294_v17 = vlaneseq  ;;  %vm323_vm1 = vcmask 1041408  }
   0xa   :  { %v1302_v7 = vld [vmem:[%s1800_s10] ss:$0 sm:$0xff]  ;;  %1082 = vmatpush.xpose.msk.msra.mxu1 %vm77_vm0, %v105_v5  ;;  %1092 = vmatpush.xpose.msk.msra.mxu2 %vm77_vm0, %v1090_v6  ;;  %v103_v9 = vld [vmem:[%s1801_s11 + $0x18] sm:$0xff]  ;;  %v102_v10 = vld [vmem:[%s1801_s11 + $0x10] sm:$0xff]  ;;  %vm345_vm2 = vcmask 1046528   ;;  %s1364_s28 = smov 32  }
   0xb   :  { %v95_v8 = vld [vmem:[%s1799_s9] sm:$0xff]  ;;  %198 = vmatpush.msra.mxu3 %v103_v9  ;;  %v154_v11 = vadd.f32 %v1302_v7, %v54_v2  ;;  %v1256_v13 = vld [vmem:[%s1795_s5 + $0x28] sm:$0xff]  ;;  %v1254_v23 = vld [vmem:[%s1795_s5 + $0x18] sm:$0xff]  ;;  %v1520_v24 = vshrl.u32 %v294_v17, 7  ;;  %v242_v30 = vadd.f32 %v1302_v7, %v55_v3  ;;  %s1365_s0 = smov 64   ;;  %vm371_vm7 = vcmask 523264  }
   0xc   :  { %1081 = vmatmul.msk.bf16.vlgmr.msra.gmra.mxu0 %vm77_vm0, %v56_v4  ;;  %v1303_v12 = vld [vmem:[%s1794_s4] ss:$0 sm:$0xff]  ;;  %v101_v15 = vld [vmem:[%s1801_s11 + $0x8] sm:$0xff]  ;;  %v97_v37 = vld [vmem:[%s1799_s9 + $0x10] sm:$0xff]  ;;  %vm425_vm8 = vcmask 785408   ;;  %s1057_s30 = sshll.u32 %s1805_s15, 4  ;;  %s1058_s30 = int_to_ptr.hbm [resolvable:$true] %s1057_s30 }
   0xd   :  { %1087 = vmatpush.xpose.msk.msrb.mxu0 %vm77_vm0, %v105_v5  ;;  %1083 = vmatmul.msk.f32.vlgmr.msra.gmra.mxu1 %vm77_vm0, %v95_v8  ;;  %v1255_v16 = vld [vmem:[%s1795_s5 + $0x20] sm:$0xff]  ;;  %v96_v21 = vld [vmem:[%s1799_s9 + $0x8] sm:$0xff]  ;;  %v296_v27 = vadd.s32 8, %v1520_v24  ;;  %v301_v33 = vand.u32 7, %v1520_v24  ;;  %v1260_v38 = vld [vmem:[%s1796_s6 + $0x18] sm:$0xff]  ;;  %s1367_s4 = smov 128  }
   0xe   :  { %1093 = vmatmul.msk.f32.vlgmr.msra.gmra.mxu2 %vm77_vm0, %v95_v8  ;;  %199 = vmatpush.msra.mxu3 %v102_v10  ;;  %v100_v18 = vld [vmem:[%s1801_s11] sm:$0xff]  ;;  %v1262_v22 = vld [vmem:[%s1796_s6 + $0x28] sm:$0xff]  ;;  %v98_v48 = vld [vmem:[%s1799_s9 + $0x18] sm:$0xff]  ;;  %s1368_s3 = smov 8  }
   0xf   :  { %431 = vmatpush.bf16.msrb.mxu1 %v1256_v13  ;;  %v106_v20 = vld [vmem:[%s1792_s2] sm:$0xff]  ;;  %v308_v34 = vand.u32 7, %v296_v27  ;;  %vm1545_vm3 = vcmp.lt.s32.totalorder %v301_v33, 1  ;;  %v1253_v50 = vld [vmem:[%s1795_s5 + $0x10] sm:$0xff]  ;;  %v1252_v52 = vld [vmem:[%s1795_s5 + $0x8] sm:$0xff]  ;;  %vm1594_vm5 = vcmp.lt.s32.totalorder %v301_v33, 2 }
  0x10   :  { %200 = vmatpush.msra.mxu3 %v101_v15  ;;  %v1261_v29 = vld [vmem:[%s1796_s6 + $0x20] sm:$0xff]  ;;  %v1259_v51 = vld [vmem:[%s1796_s6 + $0x10] sm:$0xff]  ;;  %v1258_v53 = vld [vmem:[%s1796_s6 + $0x8] sm:$0xff] }
  0x11   :  { %286 = vmatpush.msra.mxu0 %v103_v9  ;;  %vm1549_vm4 = vcmp.lt.s32.totalorder %v308_v34, 1  ;;  %v1251_v54 = vld [vmem:[%s1795_s5] sm:$0xff]  ;;  %v1091_v57 = vld [vmem:[%s1792_s2 + $0x8] sm:$0xff]  ;;  %vm1598_vm6 = vcmp.lt.s32.totalorder %v308_v34, 2  ;;  %v1264_v39 = vld [vmem:[%s1795_s5 + $0x38] sm:$0xff] }
  0x12   :  { %201 = vmatpush.msra.mxu3 %v100_v18  ;;  %v1257_v55 = vld [vmem:[%s1796_s6] sm:$0xff]  ;;  %v1270_v40 = vld [vmem:[%s1796_s6 + $0x38] sm:$0xff]  ;;  %v1207_v62 = vld [vmem:[%s1798_s8 + $0x10] sm:$0xff] }
  0x13   :  { %287 = vmatpush.msra.mxu0 %v102_v10  ;;  %432 = vmatpush.bf16.msrb.mxu1 %v1255_v16  ;;  %v455_v27 = vld [vmem:[%s1798_s8] sm:$0xff] }
  0x14   :  { %1097 = vmatpush.xpose.msk.msrb.mxu3 %vm77_vm0, %v1090_v6 }
  0x15   :  { %288 = vmatpush.msra.mxu0 %v101_v15  ;;  %1089 = vmatmul.msk.f32.vlgmr.msra.gmra.mxu3 %vm77_vm0, %v106_v20 }
  0x16   :  { %1084 = vmatmul.msk.f32.gmra.mxu1 %vm77_vm0, %v96_v21  ;;  %1094 = vmatmul.msk.f32.gmra.mxu2 %vm77_vm0, %v96_v21 }
  0x17   :  { %289 = vmatpush.msra.mxu0 %v100_v18  ;;  %433 = vmatpush.bf16.msrb.mxu1 %v1254_v23 }
  0x18   :  { %495 = vmatpush.bf16.msra.mxu3 %v1262_v22 }
  0x1b   :  { %434 = vmatpush.bf16.msrb.mxu1 %v1253_v50  ;;  %v387_v50 = vld [vmem:[%s1797_s7] sm:$0xff] }
  0x1c   :  { %1088 = vmatmul.msk.f32.vlgmr.msrb.gmra.mxu0 %vm77_vm0, %v154_v11  ;;  %496 = vmatpush.bf16.msra.mxu3 %v1261_v29 }
  0x1d   :  { %1098 = vmatmul.msk.f32.vlgmr.msrb.gmra.mxu3 %vm77_vm0, %v242_v30 }
  0x1e   :  { %1085 = vmatmul.msk.f32.gmra.mxu1 %vm77_vm0, %v97_v37  ;;  %1095 = vmatmul.msk.f32.gmra.mxu2 %vm77_vm0, %v97_v37 }
  0x1f   :  { %435 = vmatpush.bf16.msrb.mxu1 %v1252_v52 }
  0x20   :  { %497 = vmatpush.bf16.msra.mxu3 %v1260_v38 }
  0x23   :  { %436 = vmatpush.bf16.msrb.mxu1 %v1251_v54 }
  0x24   :  { %498 = vmatpush.bf16.msra.mxu3 %v1259_v51  ;;  %1099 = vmatmul.msk.f32.vlgmr.msra.gmra.mxu0 %vm77_vm0, %v1091_v57 }
  0x26   :  { %1086 = vmatmul.msk.f32.gmra.mxu1 %vm77_vm0, %v98_v48  ;;  %1096 = vmatmul.msk.f32.gmra.mxu2 %vm77_vm0, %v98_v48 }
  0x28   :  { %499 = vmatpush.bf16.msra.mxu3 %v1258_v53 }
  0x2c   :  { %500 = vmatpush.bf16.msra.mxu3 %v1257_v55 }
  0x89   :  { %v90_v14 = vpop.f32.mrf.mxu0 }
  0x8a   :  { %v1505_v19 = vadd.f32 %v1303_v12, %v90_v14  ;;  %v139_v56 = vpop.f32.mrf.mxu1 }
  0x8b   :  { %v178_v18 = vmul.f32 0.70710677, %v139_v56 }
  0x8c   :  { %v324_v25 = vrot.slane %v1505_v19, 6 }
  0x8e   :  { %v1534_v31 = vsel %vm323_vm1, 0.0, %v324_v25 }
  0x8f   :  { %v346_v41 = vrot.slane %v1534_v31, 1  ;;  %v336_v4 = vsel %vm1594_vm5, 0.0, %v1534_v31 }
  0x91   :  { %v92_v26 = vpop.f32.mrf.mxu0  ;;  %v230_v58 = vpop.f32.mrf.mxu2 }
  0x92   :  { %v1528_v28 = vadd.f32 %v1303_v12, %v92_v26 }
  0x93   :  { %v142_v59 = vpop.f32.mrf.mxu1 }
  0x94   :  { %v325_v32 = vrot.slane %v1528_v28, 6  ;;  %v1287_v49 = vpack.i.bf16 %v1528_v28, %v1505_v19  ;;  %v179_v17 = vmul.f32 0.70710677, %v142_v59 }
  0x96   :  { %v349_v35 = vrot.slane %v325_v32, 1  ;;  %v326_v36 = vsel %vm323_vm1, %v324_v25, %v325_v32  ;;  %v1623_v25 = vmul.f32 0.70710677, %v230_v58  ;;  %v456_v32 = vld [vmem:[%s1798_s8 + $0x8] sm:$0xff] }
  0x97   :  { %v347_v42 = vrot.slane %v326_v36, 1  ;;  %v337_v5 = vsel %vm1598_vm6, 0.0, %v326_v36 }
  0x98   :  { %v1617_v23 = vpop.f32.mrf.mxu3 }
  0x99   :  { %v348_v43 = vsel %vm345_vm2, %v346_v41, %v347_v42  ;;  %v350_v44 = vsel %vm345_vm2, %v347_v42, %v349_v35  ;;  %v233_v61 = vpop.f32.mrf.mxu2 }
  0x9a   :  { %v353_v45 = vsel %vm1545_vm3, 0.0, %v348_v43  ;;  %v354_v46 = vsel %vm1549_vm4, 0.0, %v350_v44  ;;  %v1619_v24 = vmul.f32 0.70710677, %v233_v61 }
  0x9b   :  { %v1282_v47 = vpack.i.bf16 %v354_v46, %v353_v45  ;;  %v145_v2 = vpop.f32.mrf.mxu1  ;;  %v175_v45 = vpop.f32.mrf.mxu0 }
  0x9c   :  { %v180_v15 = vmul.f32 0.70710677, %v145_v2  ;;  %v388_v2 = vld [vmem:[%s1797_s7 + $0x8] sm:$0xff] }
  0x9d   :  { %1283 = vrot.lane.b32.xlu0 %v1282_v47, %s1364_s28 }
  0xa0   :  { %v1628_v26 = vpop.f32.mrf.mxu3 }
  0xa1   :  { %v236_v13 = vpop.f32.mrf.mxu2 }
  0xa2   :  { %v1613_v21 = vmul.f32 0.70710677, %v236_v13 }
  0xa3   :  { %v148_v14 = vpop.f32.mrf.mxu1 }
  0xa4   :  { %v181_v16 = vmul.f32 0.70710677, %v148_v14  ;;  %v1659_v14 = vmul.f32 0.70710677, %v1628_v26 }
  0xa5   :  { %1288 = vrot.lane.b32.xlu0 %v1287_v49, %s1365_s0 }
  0xa6   :  { %562 = vmatpush.msrb.mxu0 %v181_v16 }
  0xa8   :  { %563 = vmatpush.msrb.mxu0 %v180_v15 }
  0xa9   :  { %v239_v20 = vpop.f32.mrf.mxu2 }
  0xaa   :  { %564 = vmatpush.msrb.mxu0 %v179_v17  ;;  %v1615_v22 = vmul.f32 0.70710677, %v239_v20 }
  0xac   :  { %565 = vmatpush.msrb.mxu0 %v178_v18  ;;  %623 = vmatpush.msrb.mxu2 %v1615_v22 }
  0xae   :  { %603 = vmatpush.msra.mxu0 %v1617_v23  ;;  %624 = vmatpush.msrb.mxu2 %v1613_v21 }
  0xb0   :  { %625 = vmatpush.msrb.mxu2 %v1619_v24 }
  0xb2   :  { %626 = vmatpush.msrb.mxu2 %v1623_v25 }
  0xb4   :  { %902 = vmatpush.msra.mxu2 %v181_v16 }
  0xb6   :  { %903 = vmatpush.msra.mxu2 %v180_v15 }
  0xb8   :  { %904 = vmatpush.msra.mxu2 %v179_v17 }
  0xba   :  { %905 = vmatpush.msra.mxu2 %v178_v18 }
 0x10f   :  { %v1284_v60 = vpop.permute.xlu0 %1283 }
 0x110   :  { %v1286_v0 = vunpack.i.h.bf16 %v1284_v60  ;;  %v1285_v1 = vunpack.i.l.bf16 %v1284_v60 }
 0x112   :  { %v369_v8 = vsel %vm77_vm0, %v336_v4, %v1285_v1  ;;  %v370_v9 = vsel %vm77_vm0, %v337_v5, %v1286_v0  ;;  %v291_v1 = vpop.f32.mrf.mxu0 }
 0x117   :  { %v1289_v3 = vpop.permute.xlu0 %1288 }
 0x118   :  { %v1291_v6 = vunpack.i.h.bf16 %v1289_v3  ;;  %v1290_v7 = vunpack.i.l.bf16 %v1289_v3 }
 0x11a   :  { %v372_v10 = vsel %vm371_vm7, %v369_v8, %v1290_v7  ;;  %v373_v11 = vsel %vm371_vm7, %v370_v9, %v1291_v6 }
 0x11b   :  { %v374_v12 = vpack.c.bf16 %v373_v11, %v372_v10  ;;  %v1654_v10 = vmul.f32 0.70710677, %v175_v45 }
 0x11d   :  { %1124 = vmatmul.msk.bf16.vlgmr.msrb.gmra.mxu1 %vm425_vm8, %v374_v12  ;;  %1149 = vmatmul.msk.bf16.vlgmr.msra.gmra.mxu3 %vm425_vm8, %v374_v12 }
 0x19a   :  { %v438_v46 = vpop.f32.mrf.mxu1 }
 0x19b   :  { %v439_v54 = vadd.f32 %v438_v46, %v387_v50  ;;  %v1266_v46 = vld [vmem:[%s1795_s5 + $0x48] sm:$0xff] }
 0x1a0   :  { %v502_v29 = vpop.f32.mrf.mxu3 }
 0x1a1   :  { %v503_v30 = vadd.f32 %v502_v29, %v455_v27 }
 0x1a2   :  { %v440_v3 = vpop.f32.mrf.mxu1 }
 0x1a3   :  { %v1150_v31 = vmul.f32 -1.442695, %v503_v30  ;;  %v441_v6 = vadd.f32 %v440_v3, %v388_v2 }
 0x1a5   :  { %1306 = vpow2.f32 %v1150_v31 }
 0x1a8   :  { %v504_v33 = vpop.f32.mrf.mxu3 }
 0x1a9   :  { %v505_v34 = vadd.f32 %v504_v33, %v456_v32 }
 0x1ab   :  { %v1307_v35 = vpop.eup %1306  ;;  %v1151_v36 = vmul.f32 -1.442695, %v505_v34 }
 0x1ac   :  { %v513_v37 = vadd.f32 1.0, %v1307_v35 }
 0x1ad   :  { %1308 = vpow2.f32 %v1151_v36 }
 0x1ae   :  { %1310 = vrcp.f32 %v513_v37  ;;  %v526_v47 = vand.u32 2147483648, %v513_v37  ;;  %v524_v49 = vand.u32 2147483647, %v513_v37  ;;  %vm520_vm10 = vweird.f32 %v513_v37 }
 0x1b0   :  { %v527_v53 = vor.u32 1.1754944e-38, %v526_v47  ;;  %vm525_vm12 = vcmp.eq.f32.partialorder %v524_v49, 8.507059e+37  ;;  %v1272_v47 = vld [vmem:[%s1796_s6 + $0x48] sm:$0xff] }
 0x1b3   :  { %v1309_v38 = vpop.eup %1308 }
 0x1b4   :  { %v1311_v41 = vpop.eup %1310  ;;  %v514_v42 = vadd.f32 1.0, %v1309_v38 }
 0x1b5   :  { %v516_v43 = vmul.f32 %v1311_v41, %v513_v37  ;;  %vm521_vm9 = vweird.f32 %v1311_v41  ;;  %v1671_v37 = vld [vmem:[%s1802_s12] ss:$0 sm:$0xff] }
 0x1b6   :  { %1312 = vrcp.f32 %v514_v42  ;;  %vm522_vm11 = vmor %vm520_vm10, %vm521_vm9  ;;  %v541_v60 = vand.u32 2147483648, %v514_v42  ;;  %v539_v0 = vand.u32 2147483647, %v514_v42  ;;  %vm535_vm14 = vweird.f32 %v514_v42 }
 0x1b7   :  { %v517_v44 = vsub.f32 1.0, %v516_v43  ;;  %vm570_vm10 = vcmask 64512   ;;  %v1267_v43 = vld [vmem:[%s1795_s5 + $0x50] sm:$0xff] }
 0x1b8   :  { %v542_v5 = vor.u32 1.1754944e-38, %v541_v60  ;;  %vm540_vm9 = vcmp.eq.f32.partialorder %v539_v0, 8.507059e+37 }
 0x1b9   :  { %v518_v48 = vmul.f32 %v1311_v41, %v517_v44  ;;  %v1273_v44 = vld [vmem:[%s1796_s6 + $0x50] sm:$0xff] }
 0x1bb   :  { %v519_v51 = vadd.f32 %v1311_v41, %v518_v48 }
 0x1bc   :  { %v1313_v52 = vpop.eup %1312 }
 0x1bd   :  { %v531_v55 = vmul.f32 %v1313_v52, %v514_v42  ;;  %v523_v56 = vsel %vm522_vm11, %v1311_v41, %v519_v51  ;;  %vm536_vm13 = vweird.f32 %v1313_v52  ;;  %v1268_v42 = vld [vmem:[%s1795_s5 + $0x58] sm:$0xff] }
 0x1be   :  { %v528_v57 = vsel %vm525_vm12, %v527_v53, %v523_v56  ;;  %vm537_vm15 = vmor %vm535_vm14, %vm536_vm13  ;;  %769 = vmatpush.bf16.msra.mxu1 %v1268_v42 }
 0x1bf   :  { %v532_v58 = vsub.f32 1.0, %v531_v55  ;;  %v1639_v59 = vmul.f32 %v528_v57, %v439_v54 }
 0x1c1   :  { %1152 = vmatmul.msk.f32.vlgmr.msrb.gmra.mxu0 %vm77_vm0, %v1639_v59  ;;  %v533_v61 = vmul.f32 %v1313_v52, %v532_v58 }
 0x1c2   :  { %660 = vmatpush.msrb.mxu0 %v291_v1  ;;  %770 = vmatpush.bf16.msra.mxu1 %v1267_v43 }
 0x1c3   :  { %v534_v4 = vadd.f32 %v1313_v52, %v533_v61 }
 0x1c5   :  { %v538_v7 = vsel %vm537_vm15, %v1313_v52, %v534_v4 }
 0x1c6   :  { %v543_v8 = vsel %vm540_vm9, %v542_v5, %v538_v7  ;;  %771 = vmatpush.bf16.msra.mxu1 %v1266_v46  ;;  %v1271_v7 = vld [vmem:[%s1796_s6 + $0x40] sm:$0xff] }
 0x1c7   :  { %v1646_v9 = vmul.f32 %v543_v8, %v441_v6  ;;  %v1265_v6 = vld [vmem:[%s1795_s5 + $0x40] sm:$0xff]  ;;  %v1263_v8 = vld [vmem:[%s1795_s5 + $0x30] sm:$0xff] }
 0x1c9   :  { %1154 = vmatmul.msk.f32.vlgmr.msrb.gmra.mxu2 %vm77_vm0, %v1646_v9 }
 0x1ca   :  { %959 = vmatpush.msrb.mxu2 %v1615_v22  ;;  %772 = vmatpush.bf16.msra.mxu1 %v1265_v6 }
 0x1cc   :  { %960 = vmatpush.msrb.mxu2 %v1613_v21 }
 0x1ce   :  { %961 = vmatpush.msrb.mxu2 %v1619_v24  ;;  %773 = vmatpush.bf16.msra.mxu1 %v1264_v39 }
 0x1d0   :  { %962 = vmatpush.msrb.mxu2 %v1623_v25 }
 0x1d2   :  { %774 = vmatpush.bf16.msra.mxu1 %v1263_v8 }
 0x23e   :  { %v567_v11 = vpop.f32.mrf.mxu0 }
 0x23f   :  { %v568_v12 = vadd.f32 %v567_v11, %v1654_v10 }
 0x241   :  { %v571_v13 = vsel %vm570_vm10, %v568_v12, -inf }
 0x242   :  { %572 = vmax.xlane.f32.xlu1 %v571_v13 }
 0x24c   :  { %v628_v15 = vpop.f32.mrf.mxu2 }
 0x24d   :  { %v629_v16 = vadd.f32 %v628_v15, %v1659_v14 }
 0x24f   :  { %v631_v17 = vsel %vm570_vm10, %v629_v16, -inf }
 0x250   :  { %632 = vmax.xlane.f32.xlu1 %v631_v17 }
 0x2b5   :  { %v573_v18 = vpop.xlane.xlu1 %572 }
 0x2b6   :  { %v574_v20 = vsub.f32 %v568_v12, %v573_v18 }
 0x2b8   :  { %v575_v21 = vmul.f32 1.442695, %v574_v20 }
 0x2ba   :  { %1314 = vpow2.f32 %v575_v21 }
 0x2c0   :  { %v1315_v22 = vpop.eup %1314 }
 0x2c1   :  { %v577_v24 = vsel %vm570_vm10, %v1315_v22, 0.0 }
 0x2c2   :  { %578 = vadd.xlane.f32.xlu2 %v577_v24 }
 0x2c3   :  { %v633_v25 = vpop.xlane.xlu1 %632 }
 0x2c4   :  { %v634_v27 = vsub.f32 %v629_v16, %v633_v25 }
 0x2c6   :  { %v635_v29 = vmul.f32 1.442695, %v634_v27 }
 0x2c8   :  { %1316 = vpow2.f32 %v635_v29 }
 0x2ce   :  { %v1317_v26 = vpop.eup %1316 }
 0x2cf   :  { %v637_v30 = vsel %vm570_vm10, %v1317_v26, 0.0 }
 0x2d0   :  { %638 = vadd.xlane.f32.xlu2 %v637_v30  ;;  %v1208_v30 = vld [vmem:[%s1798_s8 + $0x18] sm:$0xff] }
 0x335   :  { %v579_v31 = vpop.xlane.xlu2 %578 }
 0x336   :  { %1318 = vrcp.f32 %v579_v31 }
 0x33c   :  { %v1319_v32 = vpop.eup %1318 }
 0x33d   :  { %v581_v33 = vmul.f32 %v1319_v32, %v1315_v22 }
 0x33f   :  { %1153 = vmatmul.msk.f32.vlgmr.msra.gmra.mxu0 %vm570_vm10, %v581_v33 }
 0x340   :  { %939 = vmatpush.msra.mxu0 %v1617_v23  ;;  %v1274_v23 = vld [vmem:[%s1796_s6 + $0x58] sm:$0xff] }
 0x341   :  { %835 = vmatpush.bf16.msrb.mxu3 %v1274_v23 }
 0x343   :  { %v639_v34 = vpop.xlane.xlu2 %638 }
 0x344   :  { %1320 = vrcp.f32 %v639_v34 }
 0x345   :  { %836 = vmatpush.bf16.msrb.mxu3 %v1273_v44 }
 0x349   :  { %837 = vmatpush.bf16.msrb.mxu3 %v1272_v47  ;;  %v1168_v47 = vld [vmem:[%s1797_s7 + $0x10] sm:$0xff] }
 0x34a   :  { %v1321_v35 = vpop.eup %1320 }
 0x34b   :  { %v641_v36 = vmul.f32 %v1321_v35, %v1317_v26 }
 0x34d   :  { %1155 = vmatmul.msk.f32.vlgmr.msrb.gmra.mxu0 %vm570_vm10, %v641_v36  ;;  %838 = vmatpush.bf16.msrb.mxu3 %v1271_v7 }
 0x34e   :  { %996 = vmatpush.msrb.mxu0 %v291_v1 }
 0x351   :  { %839 = vmatpush.bf16.msrb.mxu3 %v1270_v40 }
 0x3bc   :  { %v605_v38 = vpop.f32.mrf.mxu0 }
 0x3bd   :  { %v606_v41 = vadd.f32 %v1671_v37, %v605_v38 }
 0x3bf   :  { %v665_v45 = vadd.f32 %v606_v41, %v1639_v59 }
 0x3c1   :  { %v667_v48 = vmul.f32 0.70710677, %v665_v45 }
 0x3c3   :  { %v669_v49 = vadd.f32 %v667_v48, %v1505_v19 }
 0x3c5   :  { %v1695_v52 = vmul.f32 0.70710677, %v669_v49 }
 0x3c7   :  { %v675_v55 = vrot.slane %v1695_v52, 6 }
 0x3c9   :  { %v680_v19 = vsel %vm323_vm1, 0.0, %v675_v55 }
 0x3ca   :  { %v662_v50 = vpop.f32.mrf.mxu0  ;;  %v684_v0 = vrot.slane %v680_v19, 1  ;;  %v681_v18 = vsel %vm1594_vm5, 0.0, %v680_v19 }
 0x3cb   :  { %v663_v51 = vadd.f32 %v1671_v37, %v662_v50 }
 0x3cd   :  { %v666_v53 = vadd.f32 %v663_v51, %v1646_v9  ;;  %v1269_v9 = vld [vmem:[%s1796_s6 + $0x30] sm:$0xff] }
 0x3ce   :  { %840 = vmatpush.bf16.msrb.mxu3 %v1269_v9 }
 0x3cf   :  { %v668_v54 = vmul.f32 0.70710677, %v666_v53 }
 0x3d1   :  { %v670_v56 = vadd.f32 %v668_v54, %v1528_v28 }
 0x3d3   :  { %v1700_v57 = vmul.f32 0.70710677, %v670_v56 }
 0x3d5   :  { %v676_v58 = vrot.slane %v1700_v57, 6  ;;  %v1297_v59 = vpack.i.bf16 %v1700_v57, %v1695_v52 }
 0x3d7   :  { %1298 = vrot.lane.b32.xlu1 %v1297_v59, %s1365_s0  ;;  %v677_v60 = vsel %vm323_vm1, %v675_v55, %v676_v58  ;;  %v687_v61 = vrot.slane %v676_v58, 1  ;;  %s1366_s0 = smov [#allocation2]  }
 0x3d8   :  { %v685_v1 = vrot.slane %v677_v60, 1  ;;  %v682_v20 = vsel %vm1598_vm6, 0.0, %v677_v60  ;;  %s1055_s26 = sshll.u32 %s1366_s0, 4  ;;  %s1056_s26 = int_to_ptr.vmem [resolvable:$true] %s1055_s26 }
 0x3da   :  { %v686_v2 = vsel %vm345_vm2, %v684_v0, %v685_v1  ;;  %v688_v28 = vsel %vm345_vm2, %v685_v1, %v687_v61  ;;  %v1169_v61 = vld [vmem:[%s1797_s7 + $0x18] sm:$0xff] }
 0x3db   :  { %v691_v3 = vsel %vm1545_vm3, 0.0, %v686_v2  ;;  %v692_v4 = vsel %vm1549_vm4, 0.0, %v688_v28 }
 0x3dc   :  { %v1292_v5 = vpack.i.bf16 %v692_v4, %v691_v3 }
 0x3de   :  { %1293 = vrot.lane.b32.xlu0 %v1292_v5, %s1364_s28 }
 0x449   :  { %v1299_v11 = vpop.permute.xlu1 %1298 }
 0x44a   :  { %v1301_v16 = vunpack.i.h.bf16 %v1299_v11  ;;  %v1300_v17 = vunpack.i.l.bf16 %v1299_v11 }
 0x450   :  { %v1294_v12 = vpop.permute.xlu0 %1293 }
 0x451   :  { %v1296_v13 = vunpack.i.h.bf16 %v1294_v12  ;;  %v1295_v15 = vunpack.i.l.bf16 %v1294_v12 }
 0x453   :  { %v707_v21 = vsel %vm77_vm0, %v681_v18, %v1295_v15  ;;  %v708_v22 = vsel %vm77_vm0, %v682_v20, %v1296_v13 }
 0x454   :  { %v709_v24 = vsel %vm371_vm7, %v707_v21, %v1300_v17  ;;  %v710_v25 = vsel %vm371_vm7, %v708_v22, %v1301_v16 }
 0x455   :  { %v711_v27 = vpack.c.bf16 %v710_v25, %v709_v24 }
 0x457   :  { %1194 = vmatmul.msk.bf16.vlgmr.msra.gmra.mxu1 %vm425_vm8, %v711_v27  ;;  %1233 = vmatmul.msk.bf16.vlgmr.msrb.gmra.mxu3 %vm425_vm8, %v711_v27 }
 0x4d4   :  { %v776_v43 = vpop.f32.mrf.mxu1 }
 0x4d5   :  { %v777_v51 = vadd.f32 %v1168_v47, %v776_v43 }
 0x4da   :  { %v842_v29 = vpop.f32.mrf.mxu3 }
 0x4db   :  { %v843_v63 = vadd.f32 %v1207_v62, %v842_v29  ;;  %v1276_v29 = vld [vmem:[%s1803_s13 + $0x8] sm:$0xff] }
 0x4dc   :  { %v778_v0 = vpop.f32.mrf.mxu1 }
 0x4dd   :  { %v1234_v26 = vmul.f32 -1.442695, %v843_v63  ;;  %v779_v28 = vadd.f32 %v1169_v61, %v778_v0  ;;  %v1275_v63 = vld [vmem:[%s1803_s13] sm:$0xff] }
 0x4df   :  { %1322 = vpow2.f32 %v1234_v26 }
 0x4e2   :  { %v844_v31 = vpop.f32.mrf.mxu3 }
 0x4e3   :  { %v845_v32 = vadd.f32 %v1208_v30, %v844_v31 }
 0x4e5   :  { %v1323_v33 = vpop.eup %1322  ;;  %v1235_v34 = vmul.f32 -1.442695, %v845_v32 }
 0x4e6   :  { %v853_v35 = vadd.f32 1.0, %v1323_v33 }
 0x4e7   :  { %1324 = vpow2.f32 %v1235_v34 }
 0x4e8   :  { %1326 = vrcp.f32 %v853_v35  ;;  %v866_v44 = vand.u32 2147483648, %v853_v35  ;;  %v864_v46 = vand.u32 2147483647, %v853_v35  ;;  %vm860_vm2 = vweird.f32 %v853_v35 }
 0x4ea   :  { %v867_v50 = vor.u32 1.1754944e-38, %v866_v44  ;;  %vm865_vm4 = vcmp.eq.f32.partialorder %v864_v46, 8.507059e+37  ;;  %v1305_v44 = vld [vmem:[%s1804_s14] ss:$0 sm:$0xff] }
 0x4ed   :  { %v1325_v36 = vpop.eup %1324 }
 0x4ee   :  { %v1327_v38 = vpop.eup %1326  ;;  %v854_v41 = vadd.f32 1.0, %v1325_v36 }
 0x4ef   :  { %v856_v42 = vmul.f32 %v1327_v38, %v853_v35  ;;  %vm861_vm1 = vweird.f32 %v1327_v38 }
 0x4f0   :  { %1328 = vrcp.f32 %v854_v41  ;;  %vm862_vm3 = vmor %vm860_vm2, %vm861_vm1  ;;  %v881_v59 = vand.u32 2147483648, %v854_v41  ;;  %v879_v60 = vand.u32 2147483647, %v854_v41  ;;  %vm875_vm6 = vweird.f32 %v854_v41 }
 0x4f1   :  { %v857_v23 = vsub.f32 1.0, %v856_v42 }
 0x4f2   :  { %v882_v2 = vor.u32 1.1754944e-38, %v881_v59  ;;  %vm880_vm8 = vcmp.eq.f32.partialorder %v879_v60, 8.507059e+37 }
 0x4f3   :  { %v858_v45 = vmul.f32 %v1327_v38, %v857_v23 }
 0x4f5   :  { %v859_v48 = vadd.f32 %v1327_v38, %v858_v45 }
 0x4f6   :  { %v1329_v49 = vpop.eup %1328 }
 0x4f7   :  { %v871_v53 = vmul.f32 %v1329_v49, %v854_v41  ;;  %v863_v54 = vsel %vm862_vm3, %v1327_v38, %v859_v48  ;;  %vm876_vm5 = vweird.f32 %v1329_v49 }
 0x4f8   :  { %v868_v55 = vsel %vm865_vm4, %v867_v50, %v863_v54  ;;  %vm877_vm7 = vmor %vm875_vm6, %vm876_vm5 }
 0x4f9   :  { %v872_v56 = vsub.f32 1.0, %v871_v53  ;;  %v885_v58 = vmul.f32 %v868_v55, %v777_v51 }
 0x4fb   :  { %v873_v19 = vmul.f32 %v1329_v49, %v872_v56  ;;  %1236 = vmatmul.msk.f32.vlgmr.msra.gmra.mxu2 %vm77_vm0, %v885_v58 }
 0x4fc   :  { %1039 = vmatpush.bf16.msra.mxu2 %v1276_v29 }
 0x4fd   :  { %v874_v1 = vadd.f32 %v1329_v49, %v873_v19 }
 0x4ff   :  { %v878_v3 = vsel %vm877_vm7, %v1329_v49, %v874_v1 }
 0x500   :  { %v883_v4 = vsel %vm880_vm8, %v882_v2, %v878_v3  ;;  %1040 = vmatpush.bf16.msra.mxu2 %v1275_v63 }
 0x501   :  { %v886_v5 = vmul.f32 %v883_v4, %v779_v28 }
 0x503   :  { %1238 = vmatmul.msk.f32.vlgmr.msrb.gmra.mxu2 %vm77_vm0, %v886_v5 }
 0x57e   :  { %v907_v6 = vpop.f32.mrf.mxu2 }
 0x57f   :  { %v908_v7 = vadd.f32 %v907_v6, %v1654_v10 }
 0x581   :  { %v910_v39 = vsel %vm570_vm10, %v908_v7, -inf }
 0x582   :  { %911 = vmax.xlane.f32.xlu2 %v910_v39 }
 0x586   :  { %v964_v40 = vpop.f32.mrf.mxu2 }
 0x587   :  { %v965_v8 = vadd.f32 %v964_v40, %v1659_v14 }
 0x589   :  { %v967_v9 = vsel %vm570_vm10, %v965_v8, -inf }
 0x58a   :  { %968 = vmax.xlane.f32.xlu0 %v967_v9 }
 0x5f5   :  { %v912_v11 = vpop.xlane.xlu2 %911 }
 0x5f6   :  { %v913_v12 = vsub.f32 %v908_v7, %v912_v11 }
 0x5f8   :  { %v914_v13 = vmul.f32 1.442695, %v913_v12 }
 0x5fa   :  { %1330 = vpow2.f32 %v914_v13 }
 0x5fd   :  { %v969_v15 = vpop.xlane.xlu0 %968 }
 0x5fe   :  { %v970_v16 = vsub.f32 %v965_v8, %v969_v15 }
 0x600   :  { %v1331_v17 = vpop.eup %1330  ;;  %v971_v18 = vmul.f32 1.442695, %v970_v16 }
 0x601   :  { %v916_v20 = vsel %vm570_vm10, %v1331_v17, 0.0 }
 0x602   :  { %1332 = vpow2.f32 %v971_v18  ;;  %917 = vadd.xlane.f32.xlu2 %v916_v20 }
 0x608   :  { %v1333_v10 = vpop.eup %1332 }
 0x609   :  { %v973_v21 = vsel %vm570_vm10, %v1333_v10, 0.0 }
 0x60a   :  { %974 = vadd.xlane.f32.xlu2 %v973_v21 }
 0x675   :  { %v918_v14 = vpop.xlane.xlu2 %917 }
 0x676   :  { %1334 = vrcp.f32 %v918_v14 }
 0x67c   :  { %v1335_v22 = vpop.eup %1334 }
 0x67d   :  { %v920_v24 = vmul.f32 %v1335_v22, %v1331_v17  ;;  %v975_v25 = vpop.xlane.xlu2 %974 }
 0x67e   :  { %1336 = vrcp.f32 %v975_v25 }
 0x67f   :  { %1049 = vst.msk [vmem:[%s1806_s16] sm:$0xff] %vm570_vm10, %v920_v24  ;;  %1237 = vmatmul.msk.f32.vlgmr.msra.gmra.mxu0 %vm570_vm10, %v920_v24 }
 0x684   :  { %v1337_v27 = vpop.eup %1336 }
 0x685   :  { %v977_v62 = vmul.f32 %v1337_v27, %v1333_v10 }
 0x687   :  { %1050 = vst.msk [vmem:[%s1806_s16 + $0x8] sm:$0xff] %vm570_vm10, %v977_v62  ;;  %1239 = vmatmul.msk.f32.vlgmr.msrb.gmra.mxu0 %vm570_vm10, %v977_v62 }
 0x6fc   :  { %v941_v26 = vpop.f32.mrf.mxu0 }
 0x6fd   :  { %v942_v30 = vadd.f32 %v1671_v37, %v941_v26 }
 0x6ff   :  { %v1001_v31 = vadd.f32 %v942_v30, %v885_v58 }
 0x701   :  { %v1003_v33 = vmul.f32 0.70710677, %v1001_v31 }
 0x703   :  { %v1005_v36 = vadd.f32 %v1003_v33, %v1695_v52 }
 0x704   :  { %v998_v32 = vpop.f32.mrf.mxu0 }
 0x705   :  { %v999_v34 = vadd.f32 %v1671_v37, %v998_v32  ;;  %v1007_v42 = vmul.f32 0.70710677, %v1005_v36 }
 0x707   :  { %v1002_v35 = vadd.f32 %v999_v34, %v886_v5 }
 0x709   :  { %v1004_v38 = vmul.f32 0.70710677, %v1002_v35 }
 0x70b   :  { %v1006_v41 = vadd.f32 %v1004_v38, %v1700_v57 }
 0x70d   :  { %v1008_v23 = vmul.f32 0.70710677, %v1006_v41 }
 0x70f   :  { %v1009_v43 = vpack.c.bf16 %v1008_v23, %v1007_v42 }
 0x711   :  { %1248 = vmatmul.msk.bf16.vlgmr.msra.gmra.mxu2 %vm77_vm0, %v1009_v43 }
 0x794   :  { %v1042_v45 = vpop.f32.mrf.mxu2 }
 0x795   :  { %v1043_v46 = vadd.f32 %v1305_v44, %v1042_v45 }
 0x797   :  { %1047 = vst [vmem:[#allocation2] sm:$0xff] %v1043_v46 }
 0x79c   :  { %v1044_v37 = vpop.f32.mrf.mxu2 }
 0x79d   :  { %v1045_v52 = vadd.f32 %v1305_v44, %v1044_v37 }
 0x79f   :  { %1048 = vst [vmem:[#allocation2 + $0x8] sm:$0xff] %v1045_v52 }
 0x7a0   :  { %1063 = dma.vmem_to_hbm [thread:$0]  %s1056_s26, 256, %s1058_s30, [#allocation3], %s1367_s4, %s1367_s4, %s1368_s3  }
 0x7a1   :  { %1362 = dma.done.wait [#allocation3], 256  }
 0x7a2   :  { %1363 = vsyncadd [#allocation3], 4294967040 }
 0x7a3   :  { %1072 = vsyncpa [#allocation3], 1 }

</bundles_post_ra>
